<compile_context>
chip_gen: v7x
topology: tpu7x:2x2x1
jax: 0.10.0
libtpu: 0.0.40
codegen_flags: <defaults>
</compile_context>

<pallas_src>
import functools

import jax
import jax.numpy as jnp
from jax.experimental import pallas as pl
from jax.experimental.pallas import tpu as pltpu

EPS = 1e-5


def _fc_bn_relu_fused(x_bf16, w_bf16, gamma, beta, inv_b, row_mask, mask_output):
    """Linear (no bias) -> train-mode BN folded to scale/shift -> ReLU."""
    # MXU matmul: bf16 operands, f32 accumulation.
    h = jnp.dot(x_bf16, w_bf16, preferred_element_type=jnp.float32)  # [Bp, F]
    # Batch statistics over the REAL batch only: padded rows of x are exactly
    # zero and there is no bias, so padded rows of h are exactly zero and both
    # sums already exclude them; divide by the real batch size.
    mean = jnp.sum(h, axis=0, keepdims=True) * inv_b                 # [1, F]
    var = jnp.maximum(
        jnp.sum(h * h, axis=0, keepdims=True) * inv_b - mean * mean, 0.0)
    # Fold BN into one per-feature scale/shift -> single fused pass over [Bp,F].
    scale = gamma * jax.lax.rsqrt(var + EPS)                         # [1, F]
    shift = beta - mean * scale                                      # [1, F]
    out = jnp.maximum(h * scale + shift, 0.0)                        # BN + ReLU
    if mask_output and row_mask is not None:
        # Re-zero padded rows so the next layer's statistics stay exact.
        out = jnp.where(row_mask, out, 0.0)
    return out


def decoder_kernel(x_ref,
                   w1_ref, g1_ref, be1_ref,
                   w2_ref, g2_ref, be2_ref,
                   w3_ref, g3_ref, be3_ref,
                   out_ref, *, batch_real, batch_pad):
    inv_b = jnp.float32(1.0 / batch_real)
    if batch_pad > batch_real:
        rows = jax.lax.broadcasted_iota(jnp.int32, (batch_pad, 1), 0)
        row_mask = rows < batch_real
    else:
        row_mask = None

    x = x_ref[...]  # bf16 [Bp, in_f], padded rows are zero
    h = _fc_bn_relu_fused(x, w1_ref[...], g1_ref[...], be1_ref[...],
                          inv_b, row_mask, mask_output=True)
    h = _fc_bn_relu_fused(h.astype(jnp.bfloat16), w2_ref[...], g2_ref[...],
                          be2_ref[...], inv_b, row_mask, mask_output=True)
    h = _fc_bn_relu_fused(h.astype(jnp.bfloat16), w3_ref[...], g3_ref[...],
                          be3_ref[...], inv_b, row_mask, mask_output=False)
    # Lane-dense f32 store (F is a multiple of 128 -> unmasked vst).
    out_ref[...] = h


def _round_up(n, m):
    return ((n + m - 1) // m) * m


def decoder_forward(x, params):
    """x: [B, in_features] float32. params: dict (w* bf16, g*/be*/b* f32)."""
    B, _ = x.shape
    F = params["w1"].shape[1]

    # Pad the batch to the bf16 sublane tile (16 rows).  Zero padding only
    # fixes the layout; for MXU-peak batch >=128 (v5e) / 256 (v6e/v7x) real
    # rows of requests into one call.
    Bp = _round_up(max(B, 1), 16)
    x_p = jnp.pad(x.astype(jnp.bfloat16), ((0, Bp - B), (0, 0)))

    args = (x_p,
            params["w1"], params["g1"], params["be1"],
            params["w2"], params["g2"], params["be2"],
            params["w3"], params["g3"], params["be3"])

    # VMEM limit from the actual footprint (+ activation temporaries) with
    # headroom, capped well under the 64 MiB physical VMEM of a v7x TC.
    arg_bytes = sum(int(a.size) * a.dtype.itemsize for a in args)
    act_bytes = Bp * F * 4
    vmem_limit = int(min(max(2 * (arg_bytes + 7 * act_bytes), 16 << 20),
                         48 << 20))

    vmem = pl.BlockSpec(memory_space=pltpu.MemorySpace.VMEM)
    kernel = functools.partial(decoder_kernel, batch_real=B, batch_pad=Bp)
    out = pl.pallas_call(
        kernel,
        out_shape=jax.ShapeDtypeStruct((Bp, F), jnp.float32),
        in_specs=[vmem] * len(args),
        out_specs=vmem,
        compiler_params=pltpu.CompilerParams(vmem_limit_bytes=vmem_limit),
    )(*args)
    return out[:B]


def init_params(key, in_features, out_features):
    """PyTorch-like init.  Linear weight [out,in] stored transposed [in,out]
    in bf16 (kernel dtype).  Bias is kept f32 for the reference only (the
    kernel drops it; training-mode BN cancels it).  BN gamma=1, beta=0."""
    params = {}
    dims = [(in_features, out_features),
            (out_features, out_features),
            (out_features, out_features)]
    for i, (fin, fout) in enumerate(dims, start=1):
        key, kw, kb = jax.random.split(key, 3)
        bound = 1.0 / float(fin) ** 0.5
        w = jax.random.uniform(kw, (fin, fout), jnp.float32, -bound, bound)
        params[f"w{i}"] = w.astype(jnp.bfloat16)
        params[f"b{i}"] = jax.random.uniform(
            kb, (1, fout), jnp.float32, -bound, bound)
        params[f"g{i}"] = jnp.ones((1, fout), jnp.float32)
        params[f"be{i}"] = jnp.zeros((1, fout), jnp.float32)
    return params


def decoder_reference(x, params):
    """f32 reference with PyTorch semantics (Linear WITH bias, train-mode BN
    with biased variance, ReLU)."""
    h = x
    for i in (1, 2, 3):
        w = params[f"w{i}"].astype(jnp.float32)
        h = h @ w + params[f"b{i}"]
        mean = jnp.mean(h, axis=0, keepdims=True)
        var = jnp.mean((h - mean) ** 2, axis=0, keepdims=True)
        h = (h - mean) * jax.lax.rsqrt(var + EPS) * params[f"g{i}"] \
            + params[f"be{i}"]
        h = jnp.maximum(h, 0.0)
    return h


if __name__ == "__main__":
    B, IN_F, OUT_F = 8, 32, 128

    key = jax.random.PRNGKey(0)
    key, kx = jax.random.split(key)
    # Make the input exactly bf16-representable so reference and kernel see
    # identical input values (isolates bf16-matmul rounding inside the kernel).
    x = jax.random.normal(kx, (B, IN_F), jnp.float32)
    x = x.astype(jnp.bfloat16).astype(jnp.float32)
    params = init_params(key, IN_F, OUT_F)

    out = jax.block_until_ready(decoder_forward(x, params))
    ref = decoder_reference(x, params)

    assert out.shape == (B, OUT_F)
    max_err = float(jnp.max(jnp.abs(out - ref)))
    assert jnp.allclose(out, ref, atol=5e-2, rtol=5e-2), (
        f"mismatch vs reference, max abs err = {max_err}")

    print("KERNEL_OK")
</pallas_src>

<mosaic_0001>
module attributes {stable_mosaic.version = 11 : i64} {
  func.func @decoder_kernel(%arg0: memref<16x32xbf16, #tpu.memory_space<vmem>>, %arg1: memref<32x128xbf16, #tpu.memory_space<vmem>>, %arg2: memref<1x128xf32, #tpu.memory_space<vmem>>, %arg3: memref<1x128xf32, #tpu.memory_space<vmem>>, %arg4: memref<128x128xbf16, #tpu.memory_space<vmem>>, %arg5: memref<1x128xf32, #tpu.memory_space<vmem>>, %arg6: memref<1x128xf32, #tpu.memory_space<vmem>>, %arg7: memref<128x128xbf16, #tpu.memory_space<vmem>>, %arg8: memref<1x128xf32, #tpu.memory_space<vmem>>, %arg9: memref<1x128xf32, #tpu.memory_space<vmem>>, %arg10: memref<16x128xf32, #tpu.memory_space<vmem>>) attributes {dimension_semantics = [], scalar_prefetch = 0 : i64, scratch_operands = 0 : i64, tpu.core_type = #tpu.core_type<tc>} {
    %0 = tpu.iota {dimensions = array<i32: 0>} : vector<16x1xi32>
    %c8_i32 = arith.constant 8 : i32
    %1 = vector.broadcast %c8_i32 : i32 to vector<16x1xi32>
    %2 = arith.cmpi slt, %0, %1 : vector<16x1xi32>
    %c0 = arith.constant 0 : index
    %c0_0 = arith.constant 0 : index
    %3 = vector.load %arg0[%c0, %c0_0] : memref<16x32xbf16, #tpu.memory_space<vmem>>, vector<16x32xbf16>
    %c0_1 = arith.constant 0 : index
    %c0_2 = arith.constant 0 : index
    %4 = vector.load %arg1[%c0_1, %c0_2] : memref<32x128xbf16, #tpu.memory_space<vmem>>, vector<32x128xbf16>
    %c0_3 = arith.constant 0 : index
    %c0_4 = arith.constant 0 : index
    %5 = vector.load %arg2[%c0_3, %c0_4] : memref<1x128xf32, #tpu.memory_space<vmem>>, vector<1x128xf32>
    %c0_5 = arith.constant 0 : index
    %c0_6 = arith.constant 0 : index
    %6 = vector.load %arg3[%c0_5, %c0_6] : memref<1x128xf32, #tpu.memory_space<vmem>>, vector<1x128xf32>
    %cst = arith.constant dense<0.000000e+00> : vector<16x128xf32>
    %7 = tpu.matmul %3, %4, %cst {dimension_numbers = #tpu.dot_dimension_numbers<[1], [0], [0], [1], [0, 0, 1, 1], [], []>} : vector<16x32xbf16>, vector<32x128xbf16>, vector<16x128xf32> -> vector<16x128xf32>
    %cst_7 = arith.constant dense<0.000000e+00> : vector<128xf32>
    %8 = vector.multi_reduction <add>, %7, %cst_7 [0] : vector<16x128xf32> to vector<128xf32>
    %9 = vector.shape_cast %8 : vector<128xf32> to vector<1x128xf32>
    %cst_8 = arith.constant 1.250000e-01 : f32
    %10 = vector.broadcast %cst_8 : f32 to vector<1x128xf32>
    %11 = arith.mulf %9, %10 : vector<1x128xf32>
    %12 = arith.mulf %7, %7 : vector<16x128xf32>
    %cst_9 = arith.constant dense<0.000000e+00> : vector<128xf32>
    %13 = vector.multi_reduction <add>, %12, %cst_9 [0] : vector<16x128xf32> to vector<128xf32>
    %14 = vector.shape_cast %13 : vector<128xf32> to vector<1x128xf32>
    %cst_10 = arith.constant 1.250000e-01 : f32
    %15 = vector.broadcast %cst_10 : f32 to vector<1x128xf32>
    %16 = arith.mulf %14, %15 : vector<1x128xf32>
    %17 = arith.mulf %11, %11 : vector<1x128xf32>
    %18 = arith.subf %16, %17 : vector<1x128xf32>
    %cst_11 = arith.constant 0.000000e+00 : f32
    %19 = vector.broadcast %cst_11 : f32 to vector<1x128xf32>
    %20 = arith.maximumf %18, %19 : vector<1x128xf32>
    %cst_12 = arith.constant 9.99999974E-6 : f32
    %21 = vector.broadcast %cst_12 : f32 to vector<1x128xf32>
    %22 = arith.addf %20, %21 : vector<1x128xf32>
    %23 = math.rsqrt %22 : vector<1x128xf32>
    %24 = arith.mulf %5, %23 : vector<1x128xf32>
    %25 = arith.mulf %11, %24 : vector<1x128xf32>
    %26 = arith.subf %6, %25 : vector<1x128xf32>
    %27 = vector.broadcast %24 : vector<1x128xf32> to vector<16x128xf32>
    %28 = arith.mulf %7, %27 : vector<16x128xf32>
    %29 = vector.broadcast %26 : vector<1x128xf32> to vector<16x128xf32>
    %30 = arith.addf %28, %29 : vector<16x128xf32>
    %cst_13 = arith.constant 0.000000e+00 : f32
    %31 = vector.broadcast %cst_13 : f32 to vector<16x128xf32>
    %32 = arith.maximumf %30, %31 : vector<16x128xf32>
    %cst_14 = arith.constant 0.000000e+00 : f32
    %33 = vector.shape_cast %2 : vector<16x1xi1> to vector<16x1xi1>
    %34 = vector.broadcast %33 : vector<16x1xi1> to vector<16x128xi1>
    %35 = vector.broadcast %cst_14 : f32 to vector<16x128xf32>
    %36 = arith.select %34, %32, %35 : vector<16x128xi1>, vector<16x128xf32>
    %37 = arith.truncf %36 : vector<16x128xf32> to vector<16x128xbf16>
    %c0_15 = arith.constant 0 : index
    %c0_16 = arith.constant 0 : index
    %38 = vector.load %arg4[%c0_15, %c0_16] : memref<128x128xbf16, #tpu.memory_space<vmem>>, vector<128x128xbf16>
    %c0_17 = arith.constant 0 : index
    %c0_18 = arith.constant 0 : index
    %39 = vector.load %arg5[%c0_17, %c0_18] : memref<1x128xf32, #tpu.memory_space<vmem>>, vector<1x128xf32>
    %c0_19 = arith.constant 0 : index
    %c0_20 = arith.constant 0 : index
    %40 = vector.load %arg6[%c0_19, %c0_20] : memref<1x128xf32, #tpu.memory_space<vmem>>, vector<1x128xf32>
    %cst_21 = arith.constant dense<0.000000e+00> : vector<16x128xf32>
    %41 = tpu.matmul %37, %38, %cst_21 {dimension_numbers = #tpu.dot_dimension_numbers<[1], [0], [0], [1], [0, 0, 1, 1], [], []>} : vector<16x128xbf16>, vector<128x128xbf16>, vector<16x128xf32> -> vector<16x128xf32>
    %cst_22 = arith.constant dense<0.000000e+00> : vector<128xf32>
    %42 = vector.multi_reduction <add>, %41, %cst_22 [0] : vector<16x128xf32> to vector<128xf32>
    %43 = vector.shape_cast %42 : vector<128xf32> to vector<1x128xf32>
    %cst_23 = arith.constant 1.250000e-01 : f32
    %44 = vector.broadcast %cst_23 : f32 to vector<1x128xf32>
    %45 = arith.mulf %43, %44 : vector<1x128xf32>
    %46 = arith.mulf %41, %41 : vector<16x128xf32>
    %cst_24 = arith.constant dense<0.000000e+00> : vector<128xf32>
    %47 = vector.multi_reduction <add>, %46, %cst_24 [0] : vector<16x128xf32> to vector<128xf32>
    %48 = vector.shape_cast %47 : vector<128xf32> to vector<1x128xf32>
    %cst_25 = arith.constant 1.250000e-01 : f32
    %49 = vector.broadcast %cst_25 : f32 to vector<1x128xf32>
    %50 = arith.mulf %48, %49 : vector<1x128xf32>
    %51 = arith.mulf %45, %45 : vector<1x128xf32>
    %52 = arith.subf %50, %51 : vector<1x128xf32>
    %cst_26 = arith.constant 0.000000e+00 : f32
    %53 = vector.broadcast %cst_26 : f32 to vector<1x128xf32>
    %54 = arith.maximumf %52, %53 : vector<1x128xf32>
    %cst_27 = arith.constant 9.99999974E-6 : f32
    %55 = vector.broadcast %cst_27 : f32 to vector<1x128xf32>
    %56 = arith.addf %54, %55 : vector<1x128xf32>
    %57 = math.rsqrt %56 : vector<1x128xf32>
    %58 = arith.mulf %39, %57 : vector<1x128xf32>
    %59 = arith.mulf %45, %58 : vector<1x128xf32>
    %60 = arith.subf %40, %59 : vector<1x128xf32>
    %61 = vector.broadcast %58 : vector<1x128xf32> to vector<16x128xf32>
    %62 = arith.mulf %41, %61 : vector<16x128xf32>
    %63 = vector.broadcast %60 : vector<1x128xf32> to vector<16x128xf32>
    %64 = arith.addf %62, %63 : vector<16x128xf32>
    %cst_28 = arith.constant 0.000000e+00 : f32
    %65 = vector.broadcast %cst_28 : f32 to vector<16x128xf32>
    %66 = arith.maximumf %64, %65 : vector<16x128xf32>
    %cst_29 = arith.constant 0.000000e+00 : f32
    %67 = vector.shape_cast %2 : vector<16x1xi1> to vector<16x1xi1>
    %68 = vector.broadcast %67 : vector<16x1xi1> to vector<16x128xi1>
    %69 = vector.broadcast %cst_29 : f32 to vector<16x128xf32>
    %70 = arith.select %68, %66, %69 : vector<16x128xi1>, vector<16x128xf32>
    %71 = arith.truncf %70 : vector<16x128xf32> to vector<16x128xbf16>
    %c0_30 = arith.constant 0 : index
    %c0_31 = arith.constant 0 : index
    %72 = vector.load %arg7[%c0_30, %c0_31] : memref<128x128xbf16, #tpu.memory_space<vmem>>, vector<128x128xbf16>
    %c0_32 = arith.constant 0 : index
    %c0_33 = arith.constant 0 : index
    %73 = vector.load %arg8[%c0_32, %c0_33] : memref<1x128xf32, #tpu.memory_space<vmem>>, vector<1x128xf32>
    %c0_34 = arith.constant 0 : index
    %c0_35 = arith.constant 0 : index
    %74 = vector.load %arg9[%c0_34, %c0_35] : memref<1x128xf32, #tpu.memory_space<vmem>>, vector<1x128xf32>
    %cst_36 = arith.constant dense<0.000000e+00> : vector<16x128xf32>
    %75 = tpu.matmul %71, %72, %cst_36 {dimension_numbers = #tpu.dot_dimension_numbers<[1], [0], [0], [1], [0, 0, 1, 1], [], []>} : vector<16x128xbf16>, vector<128x128xbf16>, vector<16x128xf32> -> vector<16x128xf32>
    %cst_37 = arith.constant dense<0.000000e+00> : vector<128xf32>
    %76 = vector.multi_reduction <add>, %75, %cst_37 [0] : vector<16x128xf32> to vector<128xf32>
    %77 = vector.shape_cast %76 : vector<128xf32> to vector<1x128xf32>
    %cst_38 = arith.constant 1.250000e-01 : f32
    %78 = vector.broadcast %cst_38 : f32 to vector<1x128xf32>
    %79 = arith.mulf %77, %78 : vector<1x128xf32>
    %80 = arith.mulf %75, %75 : vector<16x128xf32>
    %cst_39 = arith.constant dense<0.000000e+00> : vector<128xf32>
    %81 = vector.multi_reduction <add>, %80, %cst_39 [0] : vector<16x128xf32> to vector<128xf32>
    %82 = vector.shape_cast %81 : vector<128xf32> to vector<1x128xf32>
    %cst_40 = arith.constant 1.250000e-01 : f32
    %83 = vector.broadcast %cst_40 : f32 to vector<1x128xf32>
    %84 = arith.mulf %82, %83 : vector<1x128xf32>
    %85 = arith.mulf %79, %79 : vector<1x128xf32>
    %86 = arith.subf %84, %85 : vector<1x128xf32>
    %cst_41 = arith.constant 0.000000e+00 : f32
    %87 = vector.broadcast %cst_41 : f32 to vector<1x128xf32>
    %88 = arith.maximumf %86, %87 : vector<1x128xf32>
    %cst_42 = arith.constant 9.99999974E-6 : f32
    %89 = vector.broadcast %cst_42 : f32 to vector<1x128xf32>
    %90 = arith.addf %88, %89 : vector<1x128xf32>
    %91 = math.rsqrt %90 : vector<1x128xf32>
    %92 = arith.mulf %73, %91 : vector<1x128xf32>
    %93 = arith.mulf %79, %92 : vector<1x128xf32>
    %94 = arith.subf %74, %93 : vector<1x128xf32>
    %95 = vector.broadcast %92 : vector<1x128xf32> to vector<16x128xf32>
    %96 = arith.mulf %75, %95 : vector<16x128xf32>
    %97 = vector.broadcast %94 : vector<1x128xf32> to vector<16x128xf32>
    %98 = arith.addf %96, %97 : vector<16x128xf32>
    %cst_43 = arith.constant 0.000000e+00 : f32
    %99 = vector.broadcast %cst_43 : f32 to vector<16x128xf32>
    %100 = arith.maximumf %98, %99 : vector<16x128xf32>
    %c0_44 = arith.constant 0 : index
    %c0_45 = arith.constant 0 : index
    %101 = vector.load %arg10[%c0_44, %c0_45] : memref<16x128xf32, #tpu.memory_space<vmem>>, vector<16x128xf32>
    tpu.vector_store %arg10[%c0_44, %c0_45], %100 {strides = array<i32>} : memref<16x128xf32, #tpu.memory_space<vmem>>, vector<16x128xf32>,
    return
  }
}

</mosaic_0001>

<bundles_post_ra>
// kernel: tpu_custom_call.1
= control target key start
LH: loop header
LB: loop body
LE: loop exit
PB: predicated region body
PF: predicated region fallthrough
CT: control target
= control target key end

     0   :  { %15 = vsyncpa [#allocation3], 0  ;;  %s988_s0 = inlined_call_operand.hbm [shape: bf16[16,32], index: 0, kind: input, shape index: {}]   ;;  %s989_s1 = inlined_call_operand.hbm [shape: bf16[32,128], index: 1, kind: input, shape index: {}]   ;;  %s990_s2 = inlined_call_operand.vmem [shape: f32[1,128], index: 2, kind: input, shape index: {}]   ;;  %s991_s3 = inlined_call_operand.vmem [shape: f32[1,128], index: 3, kind: input, shape index: {}]   ;;  %s992_s4 = inlined_call_operand.hbm [shape: bf16[128,128], index: 4, kind: input, shape index: {}]   ;;  %s993_s5 = inlined_call_operand.vmem [shape: f32[1,128], index: 5, kind: input, shape index: {}]   ;;  %s994_s6 = inlined_call_operand.vmem [shape: f32[1,128], index: 6, kind: input, shape index: {}]   ;;  %s995_s7 = inlined_call_operand.hbm [shape: bf16[128,128], index: 7, kind: input, shape index: {}]   ;;  %s996_s8 = inlined_call_operand.vmem [shape: f32[1,128], index: 8, kind: input, shape index: {}]   ;;  %s997_s9 = inlined_call_operand.vmem [shape: f32[1,128], index: 9, kind: input, shape index: {}]   ;;  %s998_s10 = inlined_call_operand.hbm [shape: f32[16,128], index: 10, kind: output, shape index: {}]  }
   0x1   :  { %16 = vsyncpa [#allocation6], 0 }
   0x2   :  { %17 = vsyncpa [#allocation9], 0 }
   0x3   :  { %18 = vsyncpa [#allocation4], 0  ;;  %s787_s13 = smov [#allocation5]   ;;  %s788_s15 = smov [#allocation2]  }
   0x4   :  { %s36_s14 = sshll.u32 %s787_s13, 4  ;;  %s24_s16 = sshll.u32 %s788_s15, 4  ;;  %s37_s14 = int_to_ptr.vmem [resolvable:$true] %s36_s14  ;;  %s853_s16 = int_to_ptr.vmem [resolvable:$true] %s24_s16 }
   0x5   :  { %s669_s19 = scalar_lea.hbm %s989_s1, 256 }
   0x6   :  { %p670_p0 = scmp.ne.s32.totalorder %s989_s1, %s669_s19  ;;  %p673_p1 = scmp.lt.u32.totalorder %s669_s19, %s989_s1 }
   0x8   :  { %p675_p2 = pnand %p673_p1, %p670_p0 }
   0xa   :  { %678 = shalt.err (!%p675_p2)
}
   0xb   :  { %s679_s24 = scalar_lea.vmem %s37_s14, 256  ;;  %p684_p4 = scmp.lt.s32.totalorder %s37_s14, %s37_s14 }
   0xc   :  { %p680_p3 = scmp.ne.s32.totalorder %s37_s14, %s679_s24  ;;  %p685_p5 = scmp.lt.s32.totalorder %s679_s24, %s679_s24 }
   0xe   :  { %p686_p6 = por %p685_p5, %p684_p4 }
  0x10   :  { %p687_p7 = pnand %p686_p6, %p680_p3 }
  0x12   :  { %690 = shalt.err (!%p687_p7)
}
  0x13   :  { %s789_s25 = smov 64   ;;  %s790_s26 = smov 4  }
  0x14   :  { %42 = dma.hbm_to_vmem [thread:$0]  %s989_s1, 256, %s37_s14, [#allocation6], %s789_s25, %s789_s25, %s790_s26  }
  0x15   :  { %s691_s11 = scalar_lea.hbm %s988_s0, 128 }
  0x16   :  { %p692_p8 = scmp.ne.s32.totalorder %s988_s0, %s691_s11  ;;  %p695_p9 = scmp.lt.u32.totalorder %s691_s11, %s988_s0 }
  0x18   :  { %p697_p10 = pnand %p695_p9, %p692_p8 }
  0x1a   :  { %700 = shalt.err (!%p697_p10)
}
  0x1b   :  { %s701_s18 = scalar_lea.vmem %s853_s16, 128  ;;  %p706_p12 = scmp.lt.s32.totalorder %s853_s16, %s853_s16 }
  0x1c   :  { %p702_p11 = scmp.ne.s32.totalorder %s853_s16, %s701_s18  ;;  %p707_p13 = scmp.lt.s32.totalorder %s701_s18, %s701_s18 }
  0x1e   :  { %p708_p0 = por %p707_p13, %p706_p12 }
  0x20   :  { %p709_p1 = pnand %p708_p0, %p702_p11 }
  0x22   :  { %712 = shalt.err (!%p709_p1)
}
  0x23   :  { %30 = dma.hbm_to_vmem [thread:$0]  %s988_s0, 128, %s853_s16, [#allocation3], %s789_s25, %s789_s25, %s790_s26  }
  0x24   :  { %s791_s19 = smov [#allocation7]   ;;  %s792_s21 = smov [#allocation8]  }
  0x25   :  { %s52_s20 = sshll.u32 %s791_s19, 4  ;;  %s68_s22 = sshll.u32 %s792_s21, 4  ;;  %s53_s20 = int_to_ptr.vmem [resolvable:$true] %s52_s20  ;;  %s890_s22 = int_to_ptr.vmem [resolvable:$true] %s68_s22 }
  0x26   :  { %s713_s27 = scalar_lea.hbm %s992_s4, 1024 }
  0x27   :  { %p714_p2 = scmp.ne.s32.totalorder %s992_s4, %s713_s27  ;;  %p717_p3 = scmp.lt.u32.totalorder %s713_s27, %s992_s4 }
  0x29   :  { %p719_p4 = pnand %p717_p3, %p714_p2 }
  0x2b   :  { %722 = shalt.err (!%p719_p4)
}
  0x2c   :  { %s723_s0 = scalar_lea.vmem %s53_s20, 1024  ;;  %p728_p6 = scmp.lt.s32.totalorder %s53_s20, %s53_s20 }
  0x2d   :  { %p724_p5 = scmp.ne.s32.totalorder %s53_s20, %s723_s0  ;;  %p729_p7 = scmp.lt.s32.totalorder %s723_s0, %s723_s0 }
  0x2f   :  { %p730_p8 = por %p729_p7, %p728_p6 }
  0x31   :  { %p731_p9 = pnand %p730_p8, %p724_p5 }
  0x33   :  { %734 = shalt.err (!%p731_p9)
}
  0x34   :  { %58 = dma.hbm_to_vmem [thread:$0]  %s992_s4, 1024, %s53_s20, [#allocation6], %s789_s25, %s789_s25, %s790_s26  }
  0x35   :  { %s735_s17 = scalar_lea.hbm %s995_s7, 1024 }
  0x36   :  { %p736_p10 = scmp.ne.s32.totalorder %s995_s7, %s735_s17  ;;  %p739_p11 = scmp.lt.u32.totalorder %s735_s17, %s995_s7 }
  0x38   :  { %p741_p12 = pnand %p739_p11, %p736_p10 }
  0x3a   :  { %744 = shalt.err (!%p741_p12)
}
  0x3b   :  { %s745_s21 = scalar_lea.vmem %s890_s22, 1024  ;;  %p750_p0 = scmp.lt.s32.totalorder %s890_s22, %s890_s22 }
  0x3c   :  { %p746_p13 = scmp.ne.s32.totalorder %s890_s22, %s745_s21  ;;  %p751_p1 = scmp.lt.s32.totalorder %s745_s21, %s745_s21 }
  0x3e   :  { %p752_p2 = por %p751_p1, %p750_p0 }
  0x40   :  { %p753_p3 = pnand %p752_p2, %p746_p13 }
  0x42   :  { %756 = shalt.err (!%p753_p3)
}
  0x43   :  { %74 = dma.hbm_to_vmem [thread:$0]  %s995_s7, 1024, %s890_s22, [#allocation9], %s789_s25, %s789_s25, %s790_s26  }
  0x44   :  { %779 = dma.done.wait [#allocation3], 128  }
  0x45   :  { %780 = vsyncadd [#allocation3], 4294967168 }
  0x46   :  { %781 = dma.done.wait [#allocation6], 1280  }
  0x47   :  { %782 = vsyncadd [#allocation6], 4294966016 }
  0x48   :  { %783 = dma.done.wait [#allocation9], 1024  }
  0x49   :  { %784 = vsyncadd [#allocation9], 4294966272  ;;  %v793_v0 = vmov 0.0   ;;  %vm794_vm0 = vmmov 0   ;;  %v644_v1 = vld [vmem:[#allocation5] sm:$0xff]   ;;  %v645_v2 = vld [vmem:[#allocation5 + $0x8] sm:$0xff]   ;;  %v194_v38 = vlaneseq }
  0x4a   :  { %585 = vmatprep.subr.bf16.mxu0 %v793_v0  ;;  %589 = vmatprep.mubr.msk.bf16.mxu0 %vm794_vm0, %v793_v0  ;;  %vm122_vm1 = vcmask 261120   ;;  %v646_v3 = vld [vmem:[#allocation2] sm:$0xff]   ;;  %v647_v4 = vld [vmem:[#allocation7] sm:$0xff]   ;;  %v649_v6 = vld [vmem:[#allocation7 + $0x10] sm:$0xff]   ;;  %s795_s29 = smov [#allocation10]  }
  0x4b   :  { %593 = vmatprep.subr.bf16.mxu1 %v793_v0  ;;  %609 = vmatprep.mubr.msk.bf16.mxu1 %vm794_vm0, %v793_v0  ;;  %v648_v5 = vld [vmem:[#allocation7 + $0x8] sm:$0xff]   ;;  %v650_v7 = vld [vmem:[#allocation7 + $0x18] sm:$0xff]   ;;  %v651_v8 = vld [vmem:[#allocation7 + $0x20] sm:$0xff]   ;;  %v195_v39 = vshrl.u32 %v194_v38, 7  ;;  %s530_s30 = sshll.u32 %s795_s29, 4  ;;  %s531_s30 = int_to_ptr.vmem [resolvable:$true] %s530_s30 }
  0x4c   :  { %586 = vmatpush3.bf16.msra.mxu0 %v644_v1  ;;  %594 = vmatpush3.bf16.msra.mxu1 %v647_v4  ;;  %v652_v9 = vld [vmem:[#allocation7 + $0x28] sm:$0xff]   ;;  %v653_v10 = vld [vmem:[#allocation7 + $0x30] sm:$0xff]   ;;  %v654_v11 = vld [vmem:[#allocation7 + $0x38] sm:$0xff]   ;;  %p762_p5 = scmp.lt.s32.totalorder %s531_s30, %s531_s30 }
  0x4d   :  { %587 = vmatprep.subr.bf16.mxu0 %v793_v0  ;;  %595 = vmatprep.subr.bf16.mxu1 %v793_v0  ;;  %v103_v40 = vld [vmem:[%s990_s2] sm:$0x1]  ;;  %v944_v41 = vsub.s32 0, %v195_v39  ;;  %v655_v53 = vld [vmem:[#allocation8] sm:$0xff]   ;;  %v657_v55 = vld [vmem:[#allocation8 + $0x10] sm:$0xff]  }
  0x4e   :  { %v104_v44 = vld [vmem:[%s991_s3] sm:$0x1]  ;;  %v658_v56 = vld [vmem:[#allocation8 + $0x18] sm:$0xff]   ;;  %v659_v57 = vld [vmem:[#allocation8 + $0x20] sm:$0xff]  }
  0x4f   :  { %v656_v54 = vld [vmem:[#allocation8 + $0x8] sm:$0xff]   ;;  %v661_v59 = vld [vmem:[#allocation8 + $0x30] sm:$0xff]   ;;  %v662_v60 = vld [vmem:[#allocation8 + $0x38] sm:$0xff]  }
  0x50   :  { %588 = vmatpush3.bf16.msra.mxu0 %v645_v2  ;;  %596 = vmatpush3.bf16.msra.mxu1 %v648_v5  ;;  %v660_v58 = vld [vmem:[#allocation8 + $0x28] sm:$0xff]  }
  0x51   :  { %613 = vmatprep.subr.bf16.mxu0 %v793_v0  ;;  %597 = vmatprep.subr.bf16.mxu1 %v793_v0 }
  0x53   :  { %590 = vmatmul.mubr.msk.bf16.vlgmr.msra.gmra.mrb[0].mxu0 %vm122_vm1, %v646_v3 }
  0x54   :  { %629 = vmatprep.mubr.msk.bf16.mxu0 %vm794_vm0, %v793_v0  ;;  %598 = vmatpush3.bf16.msra.mxu1 %v649_v6 }
  0x55   :  { %599 = vmatprep.subr.bf16.mxu1 %v793_v0  ;;  %614 = vmatpush3.bf16.msra.mxu0 %v655_v53 }
  0x56   :  { %615 = vmatprep.subr.bf16.mxu0 %v793_v0 }
  0x58   :  { %600 = vmatpush3.bf16.msra.mxu1 %v650_v7 }
  0x59   :  { %601 = vmatprep.subr.bf16.mxu1 %v793_v0  ;;  %616 = vmatpush3.bf16.msra.mxu0 %v656_v54 }
  0x5a   :  { %617 = vmatprep.subr.bf16.mxu0 %v793_v0 }
  0x5c   :  { %602 = vmatpush3.bf16.msra.mxu1 %v651_v8 }
  0x5d   :  { %603 = vmatprep.subr.bf16.mxu1 %v793_v0  ;;  %618 = vmatpush3.bf16.msra.mxu0 %v657_v55 }
  0x5e   :  { %619 = vmatprep.subr.bf16.mxu0 %v793_v0 }
  0x60   :  { %604 = vmatpush3.bf16.msra.mxu1 %v652_v9 }
  0x61   :  { %605 = vmatprep.subr.bf16.mxu1 %v793_v0  ;;  %620 = vmatpush3.bf16.msra.mxu0 %v658_v56 }
  0x62   :  { %621 = vmatprep.subr.bf16.mxu0 %v793_v0 }
  0x64   :  { %606 = vmatpush3.bf16.msra.mxu1 %v653_v10 }
  0x65   :  { %607 = vmatprep.subr.bf16.mxu1 %v793_v0  ;;  %622 = vmatpush3.bf16.msra.mxu0 %v659_v57 }
  0x66   :  { %623 = vmatprep.subr.bf16.mxu0 %v793_v0 }
  0x68   :  { %608 = vmatpush3.bf16.msra.mxu1 %v654_v11 }
  0x69   :  { %624 = vmatpush3.bf16.msra.mxu0 %v660_v58 }
  0x6a   :  { %625 = vmatprep.subr.bf16.mxu0 %v793_v0 }
  0x6d   :  { %626 = vmatpush3.bf16.msra.mxu0 %v661_v59 }
  0x6e   :  { %627 = vmatprep.subr.bf16.mxu0 %v793_v0 }
  0x71   :  { %628 = vmatpush3.bf16.msra.mxu0 %v662_v60 }
 0x126   :  { %v160_v12 = vpop.f32.mrb[0].mxu0 }
 0x127   :  { %v591_v13 = vpop.f32.mrb[1].mxu0  ;;  %v175_v15 = vmul.f32 %v160_v12, %v160_v12 }
 0x128   :  { %v163_v14 = vpop.f32.mrb[2].mxu0 }
 0x129   :  { %v167_v16 = vadd.f32 %v163_v14, %v160_v12  ;;  %v176_v17 = vmul.f32 %v163_v14, %v163_v14  ;;  %v592_v18 = vpop.f32.mrb[3].mxu0 }
 0x12b   :  { %v168_v19 = vrot.slane %v167_v16, 4  ;;  %v177_v20 = vadd.f32 %v176_v17, %v175_v15 }
 0x12d   :  { %v169_v21 = vadd.f32 %v168_v19, %v167_v16  ;;  %v178_v22 = vrot.slane %v177_v20, 4 }
 0x12f   :  { %v170_v23 = vrot.slane %v169_v21, 2  ;;  %v179_v24 = vadd.f32 %v178_v22, %v177_v20 }
 0x131   :  { %v171_v25 = vadd.f32 %v170_v23, %v169_v21  ;;  %v180_v26 = vrot.slane %v179_v24, 2 }
 0x133   :  { %v172_v27 = vrot.slane %v171_v25, 1  ;;  %v181_v28 = vadd.f32 %v180_v26, %v179_v24  ;;  %v234_v24 = vld [vmem:[%s993_s5] sm:$0x1] }
 0x135   :  { %v173_v29 = vadd.f32 %v172_v27, %v171_v25  ;;  %v182_v30 = vrot.slane %v181_v28, 1  ;;  %v235_v27 = vld [vmem:[%s994_s6] sm:$0x1] }
 0x137   :  { %v174_v31 = vmul.f32 0.125, %v173_v29  ;;  %v183_v32 = vadd.f32 %v182_v30, %v181_v28 }
 0x139   :  { %v184_v33 = vmul.f32 0.125, %v183_v32  ;;  %v185_v34 = vmul.f32 %v174_v31, %v174_v31 }
 0x13b   :  { %v186_v35 = vsub.f32 %v184_v33, %v185_v34 }
 0x13d   :  { %v187_v36 = vmax.f32 %v186_v35, 0.0 }
 0x13f   :  { %v188_v37 = vadd.f32 1e-05, %v187_v36 }
 0x141   :  { %663 = vrsqrt.f32 %v188_v37 }
 0x14b   :  { %v664_v42 = vpop.eup %663 }
 0x14c   :  { %v190_v43 = vmul.f32 %v664_v42, %v103_v40 }
 0x14e   :  { %v191_v45 = vmul.f32 %v190_v43, %v174_v31  ;;  %v197_v46 = vrot.slane %v190_v43, %v944_v41 }
 0x150   :  { %v192_v47 = vsub.f32 %v104_v44, %v191_v45  ;;  %v199_v48 = vmul.f32 %v197_v46, %v160_v12 }
 0x152   :  { %v205_v49 = vrot.slane %v192_v47, %v944_v41 }
 0x154   :  { %v207_v50 = vadd.f32 %v205_v49, %v199_v48 }
 0x156   :  { %v209_v51 = vmax.f32 %v207_v50, 0.0 }
 0x158   :  { %v217_v52 = vpack.c.bf16 %v793_v0, %v209_v51 }
 0x15a   :  { %610 = vmatmul.mubr.bf16.vlgmr.msra.gmra.mrb[0].mxu1 %v217_v52 }
 0x22d   :  { %v318_v61 = vpop.f32.mrb[0].mxu1 }
 0x22e   :  { %v611_v62 = vpop.f32.mrb[1].mxu1  ;;  %v333_v1 = vmul.f32 %v318_v61, %v318_v61 }
 0x22f   :  { %v321_v63 = vpop.f32.mrb[2].mxu1  ;;  %v388_v62 = vld [vmem:[%s996_s8] sm:$0x1]  ;;  %s757_s8 = scalar_lea.vmem %s531_s30, 256 }
 0x230   :  { %v325_v2 = vadd.f32 %v321_v63, %v318_v61  ;;  %v334_v3 = vmul.f32 %v321_v63, %v321_v63  ;;  %v612_v4 = vpop.f32.mrb[3].mxu1  ;;  %p758_p4 = scmp.ne.s32.totalorder %s531_s30, %s757_s8  ;;  %p763_p6 = scmp.lt.s32.totalorder %s757_s8, %s757_s8 }
 0x232   :  { %v326_v5 = vrot.slane %v325_v2, 4  ;;  %v335_v6 = vadd.f32 %v334_v3, %v333_v1  ;;  %p764_p7 = por %p763_p6, %p762_p5 }
 0x234   :  { %v327_v7 = vadd.f32 %v326_v5, %v325_v2  ;;  %v336_v8 = vrot.slane %v335_v6, 4  ;;  %v389_v2 = vld [vmem:[%s997_s9] sm:$0x1]  ;;  %p765_p8 = pnand %p764_p7, %p758_p4 }
 0x236   :  { %v328_v9 = vrot.slane %v327_v7, 2  ;;  %v337_v10 = vadd.f32 %v336_v8, %v335_v6 }
 0x238   :  { %v329_v11 = vadd.f32 %v328_v9, %v327_v7  ;;  %v338_v12 = vrot.slane %v337_v10, 2 }
 0x23a   :  { %v330_v13 = vrot.slane %v329_v11, 1  ;;  %v339_v14 = vadd.f32 %v338_v12, %v337_v10 }
 0x23c   :  { %v331_v15 = vadd.f32 %v330_v13, %v329_v11  ;;  %v340_v16 = vrot.slane %v339_v14, 1 }
 0x23e   :  { %v332_v17 = vmul.f32 0.125, %v331_v15  ;;  %v341_v18 = vadd.f32 %v340_v16, %v339_v14 }
 0x240   :  { %v342_v19 = vmul.f32 0.125, %v341_v18  ;;  %v343_v20 = vmul.f32 %v332_v17, %v332_v17 }
 0x242   :  { %v344_v21 = vsub.f32 %v342_v19, %v343_v20 }
 0x244   :  { %v345_v22 = vmax.f32 %v344_v21, 0.0 }
 0x246   :  { %v346_v23 = vadd.f32 1e-05, %v345_v22 }
 0x248   :  { %665 = vrsqrt.f32 %v346_v23 }
 0x252   :  { %v666_v25 = vpop.eup %665 }
 0x253   :  { %v348_v26 = vmul.f32 %v666_v25, %v234_v24 }
 0x255   :  { %v349_v28 = vmul.f32 %v348_v26, %v332_v17  ;;  %v355_v29 = vrot.slane %v348_v26, %v944_v41 }
 0x257   :  { %v350_v30 = vsub.f32 %v235_v27, %v349_v28  ;;  %v357_v31 = vmul.f32 %v355_v29, %v318_v61 }
 0x259   :  { %v363_v32 = vrot.slane %v350_v30, %v944_v41 }
 0x25b   :  { %v365_v33 = vadd.f32 %v363_v32, %v357_v31 }
 0x25d   :  { %v367_v34 = vmax.f32 %v365_v33, 0.0 }
 0x25f   :  { %v371_v35 = vpack.c.bf16 %v793_v0, %v367_v34 }
 0x261   :  { %630 = vmatmul.mubr.bf16.vlgmr.msra.gmra.mrb[4].mxu0 %v371_v35 }
 0x334   :  { %v472_v36 = vpop.f32.mrb[4].mxu0 }
 0x335   :  { %v631_v37 = vpop.f32.mrb[5].mxu0  ;;  %v487_v39 = vmul.f32 %v472_v36, %v472_v36 }
 0x336   :  { %v475_v38 = vpop.f32.mrb[6].mxu0 }
 0x337   :  { %v479_v40 = vadd.f32 %v475_v38, %v472_v36  ;;  %v488_v42 = vmul.f32 %v475_v38, %v475_v38  ;;  %v632_v43 = vpop.f32.mrb[7].mxu0 }
 0x339   :  { %v480_v44 = vrot.slane %v479_v40, 4  ;;  %v489_v45 = vadd.f32 %v488_v42, %v487_v39 }
 0x33b   :  { %v481_v46 = vadd.f32 %v480_v44, %v479_v40  ;;  %v490_v47 = vrot.slane %v489_v45, 4 }
 0x33d   :  { %v482_v48 = vrot.slane %v481_v46, 2  ;;  %v491_v49 = vadd.f32 %v490_v47, %v489_v45 }
 0x33f   :  { %v483_v50 = vadd.f32 %v482_v48, %v481_v46  ;;  %v492_v51 = vrot.slane %v491_v49, 2 }
 0x341   :  { %v484_v52 = vrot.slane %v483_v50, 1  ;;  %v493_v53 = vadd.f32 %v492_v51, %v491_v49 }
 0x343   :  { %v485_v54 = vadd.f32 %v484_v52, %v483_v50  ;;  %v494_v0 = vrot.slane %v493_v53, 1 }
 0x345   :  { %v486_v55 = vmul.f32 0.125, %v485_v54  ;;  %v495_v56 = vadd.f32 %v494_v0, %v493_v53 }
 0x347   :  { %v496_v57 = vmul.f32 0.125, %v495_v56  ;;  %v497_v58 = vmul.f32 %v486_v55, %v486_v55 }
 0x349   :  { %v498_v59 = vsub.f32 %v496_v57, %v497_v58 }
 0x34b   :  { %v499_v60 = vmax.f32 %v498_v59, 0.0 }
 0x34d   :  { %v500_v61 = vadd.f32 1e-05, %v499_v60 }
 0x34f   :  { %667 = vrsqrt.f32 %v500_v61 }
 0x359   :  { %v668_v63 = vpop.eup %667 }
 0x35a   :  { %v502_v1 = vmul.f32 %v668_v63, %v388_v62 }
 0x35c   :  { %v503_v3 = vmul.f32 %v502_v1, %v486_v55  ;;  %v509_v4 = vrot.slane %v502_v1, %v944_v41 }
 0x35e   :  { %v504_v5 = vsub.f32 %v389_v2, %v503_v3  ;;  %v511_v6 = vmul.f32 %v509_v4, %v472_v36  ;;  %v512_v7 = vmul.f32 %v509_v4, %v475_v38 }
 0x360   :  { %v517_v8 = vrot.slane %v504_v5, %v944_v41 }
 0x362   :  { %v519_v9 = vadd.f32 %v517_v8, %v511_v6  ;;  %v520_v10 = vadd.f32 %v517_v8, %v512_v7 }
 0x364   :  { %v521_v11 = vmax.f32 %v519_v9, 0.0  ;;  %v522_v12 = vmax.f32 %v520_v10, 0.0 }
 0x366   :  { %524 = vst [vmem:[#allocation10 + $0x8] sm:$0xff] %v522_v12  ;;  %523 = vst [vmem:[#allocation10] sm:$0xff] %v521_v11 }
 0x367   :  { %768 = shalt.err (!%p765_p8)
}
 0x368   :  { %s769_s0 = scalar_lea.hbm %s998_s10, 256 }
 0x369   :  { %p770_p9 = scmp.ne.s32.totalorder %s998_s10, %s769_s0  ;;  %p773_p10 = scmp.lt.u32.totalorder %s769_s0, %s998_s10 }
 0x36b   :  { %p775_p11 = pnand %p773_p10, %p770_p9 }
 0x36d   :  { %778 = shalt.err (!%p775_p11)
}
 0x36e   :  { %s796_s17 = smov 128   ;;  %s797_s18 = smov 8  }
 0x36f   :  { %536 = dma.vmem_to_hbm [thread:$0]  %s531_s30, 256, %s998_s10, [#allocation4], %s796_s17, %s796_s17, %s797_s18  }
 0x370   :  { %785 = dma.done.wait [#allocation4], 256  }
 0x371   :  { %786 = vsyncadd [#allocation4], 4294967040 }
 0x372   :  { %540 = vsyncpa [#allocation3], 1 }
 0x373   :  { %541 = vsyncpa [#allocation6], 1 }
 0x374   :  { %542 = vsyncpa [#allocation9], 1 }
 0x375   :  { %543 = vsyncpa [#allocation4], 1 }

</bundles_post_ra>
